<compile_context>
chip_gen: v7x
topology: tpu7x:2x2x1
jax: 0.10.0
libtpu: 0.0.40
codegen_flags: <defaults>
</compile_context>

<pallas_src>
import functools

import jax
import jax.numpy as jnp
from jax.experimental import pallas as pl
from jax.experimental.pallas import tpu as pltpu

# MXU operand dtype. bf16 is native on v6e/v7x; accumulation is always f32.
MXU_DTYPE = jnp.bfloat16


def gvp_kernel(s_ref, v_ref, wgeo_ref, wms_ref, wmv_ref, bm_ref, wg_ref,
               bg_ref, so_ref, vo_ref):
    """One node-row tile per grid step (each row packs `fold` nodes in lanes).

    s_ref   : [TN, F*d_s_in]
    v_ref   : [TN, F*r*d_v_in]           node-major lane packing (free reshape)
    wgeo_ref: [F*r*d_v_in, r*F*hidden + F*r*d_v_out]  fused geometric RHS (bf16)
    wms_ref : [F*d_s_in, F*d_s_out]      kron(I_F, W_m[:, :d_s_in]^T)  (bf16)
    wmv_ref : [F*hidden, F*d_s_out]      kron(I_F, W_m[:, d_s_in:]^T)  (bf16)
    bm_ref  : [1, F*d_s_out]             (f32)
    wg_ref  : [F*d_s_out, F*r*d_v_out]   kron(I_F, tile(W_g^T, r))     (bf16)
    bg_ref  : [1, F*r*d_v_out]           (f32)
    so_ref  : [TN, F*d_s_out]
    vo_ref  : [TN, F*r*d_v_out]
    """
    mxu = wgeo_ref.dtype
    fh = wmv_ref.shape[0]                        # F * hidden
    n_vh = wgeo_ref.shape[1] - vo_ref.shape[1]   # r * F * hidden
    r = n_vh // fh

    # --- geometric branch: single fat MXU matmul ----------------------------
    geo = jnp.dot(v_ref[...].astype(mxu), wgeo_ref[...],
                  preferred_element_type=jnp.float32)
    vh = geo[:, :n_vh]           # [TN, r*F*hidden]  (r-major lane layout)
    vu = geo[:, n_vh:]           # [TN, F*r*d_v_out] (node-major = V_o layout)

    # ||V_h||_2 over r: sum of r full-width lane chunks (pure f32 VPU work,
    # chunks are 128-lane aligned when F*hidden is a multiple of 128).
    vh2 = vh * vh
    vnorm2 = vh2[:, :fh]
    for j in range(1, r):
        vnorm2 = vnorm2 + vh2[:, j * fh:(j + 1) * fh]
    vnorm = jnp.sqrt(vnorm2)     # [TN, F*hidden]

    # --- scalar branch: W_m([s ; ||V_h||]) as split matmul (no in-kernel cat)
    s_m = (jnp.dot(s_ref[...].astype(mxu), wms_ref[...],
                   preferred_element_type=jnp.float32)
           + jnp.dot(vnorm.astype(mxu), wmv_ref[...],
                     preferred_element_type=jnp.float32)
           + bm_ref[...])        # [TN, F*d_s_out]

    # Gate comes out directly in the V_o lane layout (W_g tiled over r and
    # block-diagonal over F), so V_o is one lane-dense store.
    gate = jax.nn.sigmoid(
        jnp.dot(s_m.astype(mxu), wg_ref[...],
                preferred_element_type=jnp.float32) + bg_ref[...])

    so_ref[...] = jnp.maximum(s_m, 0.0).astype(so_ref.dtype)   # ReLU(s_m)
    vo_ref[...] = (vu * gate).astype(vo_ref.dtype)             # single store


# --- weight-block builders (tiny tensors; run once, constant-fold under jit) --

def _kron_block(w_t, n):
    """kron(I_n, w_t): node-major block-diagonal repeat of w_t."""
    return jnp.kron(jnp.eye(n, dtype=w_t.dtype), w_t)


def _perm_block(w_t, fold, r):
    """B[(f, j, i), (k, g, o)] = delta(f,g) * delta(j,k) * w_t[i, o].

    Maps node-major input lanes (f*r*d_in + j*d_in + i) to r-MAJOR output
    lanes (j*fold*d_out + f*d_out + o), so the downstream r-reduction sums
    contiguous fold*d_out lane chunks and lands in the kron(I_F, W_mv) layout."""
    in_d, out_d = w_t.shape
    blk = jnp.einsum('fg,jk,io->fjikgo',
                     jnp.eye(fold, dtype=w_t.dtype),
                     jnp.eye(r, dtype=w_t.dtype), w_t)
    return blk.reshape(fold * r * in_d, r * fold * out_d)


def gvp_forward(s, v, params, *, node_tile=4096, lane_fold=8,
                mxu_dtype=MXU_DTYPE, out_dtype=None):
    """s: [Vn, d_s_in], v: [Vn, r, d_v_in] (PyTorch layout).
    Returns (s_o: [Vn, d_s_out], V_o: [Vn, r, d_v_out]).

    node_tile: nodes per grid step (sweep 2048-8192; per-step overhead ~0.35us;
      keep <= ~4096 on v7x's 64 MiB VMEM).
    lane_fold: nodes folded into the lane axis via free reshapes. 8 gives
      128-multiple activation widths for 16-channel GVPs (best on v6e/v7x);
      cap at 2-4 on v5e.
    out_dtype: output dtype (default: s.dtype). Pass jnp.bfloat16 to halve
      output HBM traffic; accumulation stays f32 regardless.
    """
    wh, wu, wm, bm, wg, bg = (params[k] for k in
                              ("W_h", "W_u", "W_m", "b_m", "W_g", "b_g"))
    vn, d_s_in = s.shape
    _, r, d_v_in = v.shape
    hidden = wh.shape[0]
    d_s_out = wm.shape[0]
    d_v_out = wu.shape[0]
    out_dtype = s.dtype if out_dtype is None else out_dtype
    fold = max(1, int(lane_fold))
    f32 = jnp.float32

    # --- weight prep: built exactly in f32, cast once to the MXU dtype ------
    w_h_t = wh.T.astype(f32)                          # [d_v_in, hidden]
    w_uh_t = (wu.astype(f32) @ wh.astype(f32)).T      # [d_v_in, d_v_out] composite
    wgeo = jnp.concatenate(
        [_perm_block(w_h_t, fold, r),                 # -> vh (r-major lanes)
         _kron_block(w_uh_t, fold * r)],              # -> vu (node-major lanes)
        axis=1).astype(mxu_dtype)                     # [F*r*dvi, r*F*h + F*r*dvo]
    wms = _kron_block(wm[:, :d_s_in].T.astype(f32), fold).astype(mxu_dtype)
    wmv = _kron_block(wm[:, d_s_in:].T.astype(f32), fold).astype(mxu_dtype)
    bm2 = jnp.tile(bm.reshape(1, d_s_out).astype(f32), (1, fold))
    wg2 = _kron_block(jnp.tile(wg.T.astype(f32), (1, r)), fold).astype(mxu_dtype)
    bg2 = jnp.tile(bg.reshape(1, d_v_out).astype(f32), (1, fold * r))

    # --- activations: contiguous (free) reshapes, NO transposes --------------
    rows_per_tile = max(8, (max(node_tile, fold) // fold) // 8 * 8)
    nodes_per_tile = rows_per_tile * fold
    vn_pad = pl.cdiv(vn, nodes_per_tile) * nodes_per_tile
    s_p, v_p = s, v
    if vn_pad != vn:                       # zero-pad ragged tail (sliced below)
        s_p = jnp.pad(s, ((0, vn_pad - vn), (0, 0)))
        v_p = jnp.pad(v, ((0, vn_pad - vn), (0, 0), (0, 0)))
    rows = vn_pad // fold
    s_in = s_p.reshape(rows, fold * d_s_in)
    v_in = v_p.reshape(rows, fold * r * d_v_in)
    grid = (rows // rows_per_tile,)

    def node_spec(width):
        return pl.BlockSpec((rows_per_tile, width), lambda i: (i, 0))

    def const_spec(a):                     # weights/biases stay VMEM resident
        return pl.BlockSpec(a.shape, lambda i: (0, 0))

    s_o, v_o = pl.pallas_call(
        gvp_kernel,
        grid=grid,
        in_specs=[
            node_spec(fold * d_s_in),          # s
            node_spec(fold * r * d_v_in),      # V (lane-packed over fold, r)
            const_spec(wgeo), const_spec(wms), const_spec(wmv),
            const_spec(bm2), const_spec(wg2), const_spec(bg2),
        ],
        out_specs=(node_spec(fold * d_s_out), node_spec(fold * r * d_v_out)),
        out_shape=(
            jax.ShapeDtypeStruct((rows, fold * d_s_out), out_dtype),
            jax.ShapeDtypeStruct((rows, fold * r * d_v_out), out_dtype),
        ),
        compiler_params=pltpu.CompilerParams(
            # Node axis is embarrassingly parallel (megacore / v7x 2-TC shard).
            dimension_semantics=("parallel",),
            vmem_limit_bytes=48 * 1024 * 1024,
        ),
    )(s_in, v_in, wgeo, wms, wmv, bm2, wg2, bg2)

    # Free contiguous reshapes back to per-node layout.
    s_o = s_o.reshape(vn_pad, d_s_out)
    v_o = v_o.reshape(vn_pad, r, d_v_out)
    if vn_pad != vn:
        s_o, v_o = s_o[:vn], v_o[:vn]
    return s_o, v_o


def gvp_reference(s, v, params, mxu_dtype=None, composite_vu=False):
    """Pure-JAX reference mirroring the PyTorch forward (executable branch).
    mxu_dtype: cast matmul operands like the kernel (f32 accumulation).
    composite_vu: compute V_u via the fused (W_u @ W_h) weight exactly like
    the kernel, isolating kernel bugs from bf16 rounding differences."""
    cast = (lambda x: x) if mxu_dtype is None else (lambda x: x.astype(mxu_dtype))
    wh, wu, wm, bm, wg, bg = (params[k] for k in
                              ("W_h", "W_u", "W_m", "b_m", "W_g", "b_g"))
    v_h_full = jnp.einsum("nrd,hd->nrh", cast(v), cast(wh),
                          preferred_element_type=jnp.float32)
    if composite_vu:
        w_uh = wu.astype(jnp.float32) @ wh.astype(jnp.float32)
        v_u = jnp.einsum("nrd,od->nro", cast(v), cast(w_uh),
                         preferred_element_type=jnp.float32)
    else:
        v_u = jnp.einsum("nrh,oh->nro", cast(v_h_full), cast(wu),
                         preferred_element_type=jnp.float32)
    v_h = jnp.sqrt(jnp.sum(v_h_full * v_h_full, axis=-2))
    sv = jnp.concatenate([s.astype(jnp.float32), v_h], axis=-1)
    s_m = jnp.dot(cast(sv), cast(wm.T), preferred_element_type=jnp.float32) + bm
    v_g = jnp.dot(cast(s_m), cast(wg.T), preferred_element_type=jnp.float32) + bg
    s_o = jax.nn.relu(s_m)
    v_o = v_u * jax.nn.sigmoid(v_g)[:, None, :]
    return s_o, v_o


def init_params(key, d_s_in, d_v_in, d_s_out, d_v_out, hidden):
    ks = jax.random.split(key, 6)

    def lin(k, out_d, in_d):
        bound = 1.0 / jnp.sqrt(in_d)
        return jax.random.uniform(k, (out_d, in_d), jnp.float32, -bound, bound)

    return {
        "W_h": lin(ks[0], hidden, d_v_in),
        "W_u": lin(ks[1], d_v_out, hidden),
        "W_m": lin(ks[2], d_s_out, d_s_in + hidden),
        "b_m": jax.random.uniform(ks[3], (d_s_out,), jnp.float32,
                                  -1.0 / jnp.sqrt(d_s_in + hidden),
                                  1.0 / jnp.sqrt(d_s_in + hidden)),
        "W_g": lin(ks[4], d_v_out, d_s_out),
        "b_g": jax.random.uniform(ks[5], (d_v_out,), jnp.float32,
                                  -1.0 / jnp.sqrt(d_s_out),
                                  1.0 / jnp.sqrt(d_s_out)),
    }


if __name__ == "__main__":
    # Small GVP: 256 nodes, 3-D geometric vectors, 16 scalar / 16 vector chans.
    # lane_fold=8 -> 128-lane s_m / 384-lane V_o blocks; node_tile=128 gives a
    # 2-step grid (16-row blocks) to exercise the node pipeline at demo size.
    Vn, R = 256, 3
    d_s_in, d_v_in = 16, 16
    d_s_out, d_v_out = 16, 16
    hidden = max(d_v_in, d_v_out)   # hidden_dim=None default

    key = jax.random.PRNGKey(0)
    k_s, k_v, k_p = jax.random.split(key, 3)
    s_in = jax.random.normal(k_s, (Vn, d_s_in), jnp.float32)
    v_in = jax.random.normal(k_v, (Vn, R, d_v_in), jnp.float32)
    params = init_params(k_p, d_s_in, d_v_in, d_s_out, d_v_out, hidden)

    fwd = jax.jit(functools.partial(gvp_forward, node_tile=128, lane_fold=8))
    s_o, v_o = fwd(s_in, v_in, params)
    jax.block_until_ready((s_o, v_o))

    assert s_o.shape == (Vn, d_s_out) and v_o.shape == (Vn, R, d_v_out)

    # Tight check vs a numerics-matched reference (bf16 operands, f32 accum,
    # composite W_u@W_h exactly as the kernel computes V_u).
    s_ref_m, v_ref_m = gvp_reference(s_in, v_in, params,
                                     mxu_dtype=MXU_DTYPE, composite_vu=True)
    assert jnp.allclose(s_o, s_ref_m, atol=1e-2, rtol=1e-2)
    assert jnp.allclose(v_o, v_ref_m, atol=1e-2, rtol=1e-2)

    # Loose sanity check vs the pure-f32 reference (difference is bf16 MXU
    # operand rounding only).
    s_ref32, v_ref32 = gvp_reference(s_in, v_in, params)
    assert jnp.allclose(s_o, s_ref32, atol=1e-1, rtol=1e-1)
    assert jnp.allclose(v_o, v_ref32, atol=1e-1, rtol=1e-1)

    print("KERNEL_OK")
</pallas_src>

<mosaic_0001>
module attributes {stable_mosaic.version = 11 : i64} {
  func.func @gvp_kernel(%arg0: i32, %arg1: memref<16x128xf32, #tpu.memory_space<vmem>>, %arg2: memref<16x384xf32, #tpu.memory_space<vmem>>, %arg3: memref<384x768xbf16, #tpu.memory_space<vmem>>, %arg4: memref<128x128xbf16, #tpu.memory_space<vmem>>, %arg5: memref<128x128xbf16, #tpu.memory_space<vmem>>, %arg6: memref<1x128xf32, #tpu.memory_space<vmem>>, %arg7: memref<128x384xbf16, #tpu.memory_space<vmem>>, %arg8: memref<1x384xf32, #tpu.memory_space<vmem>>, %arg9: memref<16x128xf32, #tpu.memory_space<vmem>>, %arg10: memref<16x384xf32, #tpu.memory_space<vmem>>) attributes {dimension_semantics = [#tpu.dimension_semantics<parallel>], iteration_bounds = array<i64: 2>, scalar_prefetch = 0 : i64, scratch_operands = 0 : i64, tpu.core_type = #tpu.core_type<tc>, window_params = [{transform_indices = @transform_0, window_bounds = array<i64: 16, 128>}, {transform_indices = @transform_1, window_bounds = array<i64: 16, 384>}, {pipeline_mode = #tpu.pipeline_mode<synchronous>, transform_indices = @transform_2, window_bounds = array<i64: 384, 768>}, {pipeline_mode = #tpu.pipeline_mode<synchronous>, transform_indices = @transform_3, window_bounds = array<i64: 128, 128>}, {pipeline_mode = #tpu.pipeline_mode<synchronous>, transform_indices = @transform_4, window_bounds = array<i64: 128, 128>}, {pipeline_mode = #tpu.pipeline_mode<synchronous>, transform_indices = @transform_5, window_bounds = array<i64: 1, 128>}, {pipeline_mode = #tpu.pipeline_mode<synchronous>, transform_indices = @transform_6, window_bounds = array<i64: 128, 384>}, {pipeline_mode = #tpu.pipeline_mode<synchronous>, transform_indices = @transform_7, window_bounds = array<i64: 1, 384>}, {transform_indices = @transform_8, window_bounds = array<i64: 16, 128>}, {transform_indices = @transform_9, window_bounds = array<i64: 16, 384>}]} {
    %c0 = arith.constant 0 : index
    %c0_0 = arith.constant 0 : index
    %0 = vector.load %arg2[%c0, %c0_0] : memref<16x384xf32, #tpu.memory_space<vmem>>, vector<16x384xf32>
    %1 = arith.truncf %0 : vector<16x384xf32> to vector<16x384xbf16>
    %c0_1 = arith.constant 0 : index
    %c0_2 = arith.constant 0 : index
    %2 = vector.load %arg3[%c0_1, %c0_2] : memref<384x768xbf16, #tpu.memory_space<vmem>>, vector<384x768xbf16>
    %cst = arith.constant dense<0.000000e+00> : vector<16x768xf32>
    %3 = tpu.matmul %1, %2, %cst {dimension_numbers = #tpu.dot_dimension_numbers<[1], [0], [0], [1], [0, 0, 1, 1], [], []>} : vector<16x384xbf16>, vector<384x768xbf16>, vector<16x768xf32> -> vector<16x768xf32>
    %4 = vector.extract_strided_slice %3 {offsets = [0, 0], sizes = [16, 384], strides = [1, 1]} : vector<16x768xf32> to vector<16x384xf32>
    %5 = vector.extract_strided_slice %3 {offsets = [0, 384], sizes = [16, 384], strides = [1, 1]} : vector<16x768xf32> to vector<16x384xf32>
    %6 = arith.mulf %4, %4 : vector<16x384xf32>
    %7 = vector.extract_strided_slice %6 {offsets = [0, 0], sizes = [16, 128], strides = [1, 1]} : vector<16x384xf32> to vector<16x128xf32>
    %8 = vector.extract_strided_slice %6 {offsets = [0, 128], sizes = [16, 128], strides = [1, 1]} : vector<16x384xf32> to vector<16x128xf32>
    %9 = arith.addf %7, %8 : vector<16x128xf32>
    %10 = vector.extract_strided_slice %6 {offsets = [0, 256], sizes = [16, 128], strides = [1, 1]} : vector<16x384xf32> to vector<16x128xf32>
    %11 = arith.addf %9, %10 : vector<16x128xf32>
    %12 = math.sqrt %11 : vector<16x128xf32>
    %c0_3 = arith.constant 0 : index
    %c0_4 = arith.constant 0 : index
    %13 = vector.load %arg1[%c0_3, %c0_4] : memref<16x128xf32, #tpu.memory_space<vmem>>, vector<16x128xf32>
    %14 = arith.truncf %13 : vector<16x128xf32> to vector<16x128xbf16>
    %c0_5 = arith.constant 0 : index
    %c0_6 = arith.constant 0 : index
    %15 = vector.load %arg4[%c0_5, %c0_6] : memref<128x128xbf16, #tpu.memory_space<vmem>>, vector<128x128xbf16>
    %cst_7 = arith.constant dense<0.000000e+00> : vector<16x128xf32>
    %16 = tpu.matmul %14, %15, %cst_7 {dimension_numbers = #tpu.dot_dimension_numbers<[1], [0], [0], [1], [0, 0, 1, 1], [], []>} : vector<16x128xbf16>, vector<128x128xbf16>, vector<16x128xf32> -> vector<16x128xf32>
    %17 = arith.truncf %12 : vector<16x128xf32> to vector<16x128xbf16>
    %c0_8 = arith.constant 0 : index
    %c0_9 = arith.constant 0 : index
    %18 = vector.load %arg5[%c0_8, %c0_9] : memref<128x128xbf16, #tpu.memory_space<vmem>>, vector<128x128xbf16>
    %cst_10 = arith.constant dense<0.000000e+00> : vector<16x128xf32>
    %19 = tpu.matmul %17, %18, %cst_10 {dimension_numbers = #tpu.dot_dimension_numbers<[1], [0], [0], [1], [0, 0, 1, 1], [], []>} : vector<16x128xbf16>, vector<128x128xbf16>, vector<16x128xf32> -> vector<16x128xf32>
    %20 = arith.addf %16, %19 : vector<16x128xf32>
    %c0_11 = arith.constant 0 : index
    %c0_12 = arith.constant 0 : index
    %21 = vector.load %arg6[%c0_11, %c0_12] : memref<1x128xf32, #tpu.memory_space<vmem>>, vector<1x128xf32>
    %22 = vector.broadcast %21 : vector<1x128xf32> to vector<16x128xf32>
    %23 = arith.addf %20, %22 : vector<16x128xf32>
    %24 = arith.truncf %23 : vector<16x128xf32> to vector<16x128xbf16>
    %c0_13 = arith.constant 0 : index
    %c0_14 = arith.constant 0 : index
    %25 = vector.load %arg7[%c0_13, %c0_14] : memref<128x384xbf16, #tpu.memory_space<vmem>>, vector<128x384xbf16>
    %cst_15 = arith.constant dense<0.000000e+00> : vector<16x384xf32>
    %26 = tpu.matmul %24, %25, %cst_15 {dimension_numbers = #tpu.dot_dimension_numbers<[1], [0], [0], [1], [0, 0, 1, 1], [], []>} : vector<16x128xbf16>, vector<128x384xbf16>, vector<16x384xf32> -> vector<16x384xf32>
    %c0_16 = arith.constant 0 : index
    %c0_17 = arith.constant 0 : index
    %27 = vector.load %arg8[%c0_16, %c0_17] : memref<1x384xf32, #tpu.memory_space<vmem>>, vector<1x384xf32>
    %28 = vector.broadcast %27 : vector<1x384xf32> to vector<16x384xf32>
    %29 = arith.addf %26, %28 : vector<16x384xf32>
    %30 = arith.negf %29 : vector<16x384xf32>
    %31 = math.exp %30 : vector<16x384xf32>
    %cst_18 = arith.constant 1.000000e+00 : f32
    %32 = vector.broadcast %cst_18 : f32 to vector<16x384xf32>
    %33 = arith.addf %32, %31 : vector<16x384xf32>
    %34 = arith.divf %32, %33 : vector<16x384xf32>
    %cst_19 = arith.constant 0.000000e+00 : f32
    %35 = vector.broadcast %cst_19 : f32 to vector<16x128xf32>
    %36 = arith.maximumf %23, %35 : vector<16x128xf32>
    %c0_20 = arith.constant 0 : index
    %c0_21 = arith.constant 0 : index
    %37 = vector.load %arg9[%c0_20, %c0_21] : memref<16x128xf32, #tpu.memory_space<vmem>>, vector<16x128xf32>
    tpu.vector_store %arg9[%c0_20, %c0_21], %36 {strides = array<i32>} : memref<16x128xf32, #tpu.memory_space<vmem>>, vector<16x128xf32>,
    %38 = arith.mulf %5, %34 : vector<16x384xf32>
    %c0_22 = arith.constant 0 : index
    %c0_23 = arith.constant 0 : index
    %39 = vector.load %arg10[%c0_22, %c0_23] : memref<16x384xf32, #tpu.memory_space<vmem>>, vector<16x384xf32>
    tpu.vector_store %arg10[%c0_22, %c0_23], %38 {strides = array<i32>} : memref<16x384xf32, #tpu.memory_space<vmem>>, vector<16x384xf32>,
    return
  }
  func.func @transform_0(%arg0: i32) -> (i32, i32) {
    %c0_i32 = arith.constant 0 : i32
    %c0_i32_0 = arith.constant 0 : i32
    return %arg0, %c0_i32 : i32, i32
  }
  func.func @transform_1(%arg0: i32) -> (i32, i32) {
    %c0_i32 = arith.constant 0 : i32
    %c0_i32_0 = arith.constant 0 : i32
    return %arg0, %c0_i32 : i32, i32
  }
  func.func @transform_2(%arg0: i32) -> (i32, i32) {
    %c0_i32 = arith.constant 0 : i32
    %c0_i32_0 = arith.constant 0 : i32
    %c0_i32_1 = arith.constant 0 : i32
    return %c0_i32, %c0_i32_0 : i32, i32
  }
  func.func @transform_3(%arg0: i32) -> (i32, i32) {
    %c0_i32 = arith.constant 0 : i32
    %c0_i32_0 = arith.constant 0 : i32
    %c0_i32_1 = arith.constant 0 : i32
    return %c0_i32, %c0_i32_0 : i32, i32
  }
  func.func @transform_4(%arg0: i32) -> (i32, i32) {
    %c0_i32 = arith.constant 0 : i32
    %c0_i32_0 = arith.constant 0 : i32
    %c0_i32_1 = arith.constant 0 : i32
    return %c0_i32, %c0_i32_0 : i32, i32
  }
  func.func @transform_5(%arg0: i32) -> (i32, i32) {
    %c0_i32 = arith.constant 0 : i32
    %c0_i32_0 = arith.constant 0 : i32
    %c0_i32_1 = arith.constant 0 : i32
    return %c0_i32, %c0_i32_0 : i32, i32
  }
  func.func @transform_6(%arg0: i32) -> (i32, i32) {
    %c0_i32 = arith.constant 0 : i32
    %c0_i32_0 = arith.constant 0 : i32
    %c0_i32_1 = arith.constant 0 : i32
    return %c0_i32, %c0_i32_0 : i32, i32
  }
  func.func @transform_7(%arg0: i32) -> (i32, i32) {
    %c0_i32 = arith.constant 0 : i32
    %c0_i32_0 = arith.constant 0 : i32
    %c0_i32_1 = arith.constant 0 : i32
    return %c0_i32, %c0_i32_0 : i32, i32
  }
  func.func @transform_8(%arg0: i32) -> (i32, i32) {
    %c0_i32 = arith.constant 0 : i32
    %c0_i32_0 = arith.constant 0 : i32
    return %arg0, %c0_i32 : i32, i32
  }
  func.func @transform_9(%arg0: i32) -> (i32, i32) {
    %c0_i32 = arith.constant 0 : i32
    %c0_i32_0 = arith.constant 0 : i32
    return %arg0, %c0_i32 : i32, i32
  }
}

</mosaic_0001>

<bundles_post_ra>
// kernel: gvp_forward.1
= control target key start
LH: loop header
LB: loop body
LE: loop exit
PB: predicated region body
PF: predicated region fallthrough
CT: control target
= control target key end

     0   :  { %s2844_s30 = smov 0   ;;  %s3514_s0 = inlined_call_operand.vmem [shape: f32[32,128], index: 0, kind: input, shape index: {}]   ;;  %s3515_s1 = inlined_call_operand.vmem [shape: f32[32,384], index: 1, kind: input, shape index: {}]   ;;  %s3516_s2 = inlined_call_operand.vmem [shape: bf16[384,768], index: 2, kind: input, shape index: {}]   ;;  %s3517_s3 = inlined_call_operand.vmem [shape: bf16[128,128], index: 3, kind: input, shape index: {}]   ;;  %s3518_s4 = inlined_call_operand.vmem [shape: bf16[128,128], index: 4, kind: input, shape index: {}]   ;;  %s3519_s5 = inlined_call_operand.vmem [shape: f32[1,128], index: 5, kind: input, shape index: {}]   ;;  %s3520_s6 = inlined_call_operand.vmem [shape: bf16[128,384], index: 6, kind: input, shape index: {}]   ;;  %s3521_s7 = inlined_call_operand.vmem [shape: f32[1,384], index: 7, kind: input, shape index: {}]   ;;  %s3522_s8 = inlined_call_operand.vmem [shape: f32[32,128], index: 8, kind: output, shape index: {0}]   ;;  %s3523_s9 = inlined_call_operand.vmem [shape: f32[32,384], index: 9, kind: output, shape index: {1}]  }
   0x1 LB: > { %s2174_s10 = sadd.s32 4294967295, %s2789_s30   ;;  %p2178_p0 = scmp.ge.s32.totalorder %s2789_s30, 1  ;;  %s2789_s30 = sphi %s2844_s30, %s20_s30  }
   0x2   : > { %p303_p1 = scmp.lt.s32.totalorder %s2789_s30, 3 }
   0x4   : > { %p304_p2 = pnand %p2178_p0, %p303_p1 }
   0x5   : > { %v2491_v0 = vld [vmem:[%s3516_s2 + $0x4] ss:$24 sps:$4 sm:$0xff] (!%p304_p2)   ;;  %v2495_v2 = vld [vmem:[%s3516_s2] ss:$24 sps:$4 sm:$0xff] (!%p304_p2)   ;;  %v2497_v4 = vld [vmem:[%s3516_s2 + $0x34] ss:$24 sps:$4 sm:$0xff] (!%p304_p2)  }
   0x6   : > { %307 = sbr.rel (%p304_p2) target bundleno = 840 (0x348), region = 52  ;;  %v2493_v1 = vld [vmem:[%s3516_s2 + $0xc] ss:$24 sps:$4 sm:$0xff] (!%p304_p2)   ;;  %1251 = vmatprep.subr.bf16.mxu0 (!%p304_p2), %v2491_v0  ;;  %v2496_v3 = vld [vmem:[%s3516_s2 + $0x8] ss:$24 sps:$4 sm:$0xff] (!%p304_p2)   ;;  %s2179_s12 = sshll.u32 (!%p304_p2), %s2174_s10, 1 }
   0x7   : > { %1337 = vmatprep.subr.bf16.mxu1 (!%p304_p2), %v2493_v1  ;;  %1252 = vmatpush1.bf16.msra.mxu0 (!%p304_p2), %v2495_v2  ;;  %v2499_v5 = vld [vmem:[%s3516_s2 + $0x3c] ss:$24 sps:$4 sm:$0xff] (!%p304_p2)   ;;  %v2501_v6 = vld [vmem:[%s3516_s2 + $0x30] ss:$24 sps:$4 sm:$0xff] (!%p304_p2)   ;;  %v2505_v9 = vld [vmem:[%s3516_s2 + $0x6c] ss:$24 sps:$4 sm:$0xff] (!%p304_p2)  }
   0x8   : > { %1338 = vmatpush1.bf16.msra.mxu1 (!%p304_p2), %v2496_v3  ;;  %1253 = vmatprep.subr.bf16.mxu0 (!%p304_p2), %v2497_v4  ;;  %v2502_v7 = vld [vmem:[%s3516_s2 + $0x38] ss:$24 sps:$4 sm:$0xff] (!%p304_p2)   ;;  %v2503_v8 = vld [vmem:[%s3516_s2 + $0x64] ss:$24 sps:$4 sm:$0xff] (!%p304_p2)   ;;  %v2508_v11 = vld [vmem:[%s3516_s2 + $0x68] ss:$24 sps:$4 sm:$0xff] (!%p304_p2)  }
   0x9   : > { %1339 = vmatprep.subr.bf16.mxu1 (!%p304_p2), %v2499_v5  ;;  %v2507_v10 = vld [vmem:[%s3516_s2 + $0x60] ss:$24 sps:$4 sm:$0xff] (!%p304_p2)   ;;  %v2509_v12 = vld [vmem:[%s3516_s2 + $0x94] ss:$24 sps:$4 sm:$0xff] (!%p304_p2)   ;;  %v2513_v14 = vld [vmem:[%s3516_s2 + $0x90] ss:$24 sps:$4 sm:$0xff] (!%p304_p2)  }
   0xa   : > { %v2511_v13 = vld [vmem:[%s3516_s2 + $0x9c] ss:$24 sps:$4 sm:$0xff] (!%p304_p2)   ;;  %v2514_v15 = vld [vmem:[%s3516_s2 + $0x98] ss:$24 sps:$4 sm:$0xff] (!%p304_p2)   ;;  %v2517_v17 = vld [vmem:[%s3516_s2 + $0xcc] ss:$24 sps:$4 sm:$0xff] (!%p304_p2)  }
   0xb   : > { %1254 = vmatpush1.bf16.msra.mxu0 (!%p304_p2), %v2501_v6  ;;  %v2515_v16 = vld [vmem:[%s3516_s2 + $0xc4] ss:$24 sps:$4 sm:$0xff] (!%p304_p2)   ;;  %v2519_v18 = vld [vmem:[%s3516_s2 + $0xc0] ss:$24 sps:$4 sm:$0xff] (!%p304_p2)   ;;  %v2521_v20 = vld [vmem:[%s3516_s2 + $0xf4] ss:$24 sps:$4 sm:$0xff] (!%p304_p2)  }
   0xc   : > { %1340 = vmatpush1.bf16.msra.mxu1 (!%p304_p2), %v2502_v7  ;;  %1255 = vmatprep.subr.bf16.mxu0 (!%p304_p2), %v2503_v8  ;;  %v2520_v19 = vld [vmem:[%s3516_s2 + $0xc8] ss:$24 sps:$4 sm:$0xff] (!%p304_p2)   ;;  %v2523_v21 = vld [vmem:[%s3516_s2 + $0xfc] ss:$24 sps:$4 sm:$0xff] (!%p304_p2)   ;;  %v2526_v23 = vld [vmem:[%s3516_s2 + $0xf8] ss:$24 sps:$4 sm:$0xff] (!%p304_p2)  }
   0xd   : > { %1341 = vmatprep.subr.bf16.mxu1 %v2505_v9  ;;  %v2525_v22 = vld [vmem:[%s3516_s2 + $0xf0] ss:$24 sps:$4 sm:$0xff]   ;;  %v2527_v24 = vld [vmem:[%s3516_s2 + $0x124] ss:$24 sps:$4 sm:$0xff]   ;;  %v2531_v26 = vld [vmem:[%s3516_s2 + $0x120] ss:$24 sps:$4 sm:$0xff]  }
   0xe   : > { %v2529_v25 = vld [vmem:[%s3516_s2 + $0x12c] ss:$24 sps:$4 sm:$0xff]   ;;  %v2532_v27 = vld [vmem:[%s3516_s2 + $0x128] ss:$24 sps:$4 sm:$0xff]   ;;  %v2535_v29 = vld [vmem:[%s3516_s2 + $0x15c] ss:$24 sps:$4 sm:$0xff]  }
   0xf   : > { %1256 = vmatpush1.bf16.msra.mxu0 %v2507_v10  ;;  %v2533_v28 = vld [vmem:[%s3516_s2 + $0x154] ss:$24 sps:$4 sm:$0xff]   ;;  %v2537_v30 = vld [vmem:[%s3516_s2 + $0x150] ss:$24 sps:$4 sm:$0xff]   ;;  %p352_p3 = scmp.lt.s32.totalorder %s2179_s12, 3  ;;  %vm2793_vm0 = vmmov 0  }
  0x10   : > { %1342 = vmatpush1.bf16.msra.mxu1 %v2508_v11  ;;  %1257 = vmatprep.subr.bf16.mxu0 %v2509_v12  ;;  %v2538_v31 = vld [vmem:[%s3516_s2 + $0x158] ss:$24 sps:$4 sm:$0xff]   ;;  %v2539_v32 = vld [vmem:[%s3516_s2 + $0x184] ss:$24 sps:$4 sm:$0xff]   ;;  %v2544_v35 = vld [vmem:[%s3516_s2 + $0x188] ss:$24 sps:$4 sm:$0xff]  }
  0x11   : > { %1343 = vmatprep.subr.bf16.mxu1 %v2511_v13  ;;  %v2541_v33 = vld [vmem:[%s3516_s2 + $0x18c] ss:$24 sps:$4 sm:$0xff]   ;;  %v2543_v34 = vld [vmem:[%s3516_s2 + $0x180] ss:$24 sps:$4 sm:$0xff]   ;;  %s3525_s12 = smov (!%p352_p3, %s2179_s12), 3 }
  0x12   : > { %v2545_v36 = vld [vmem:[%s3516_s2 + $0x1b4] ss:$24 sps:$4 sm:$0xff]   ;;  %v2549_v38 = vld [vmem:[%s3516_s2 + $0x1b0] ss:$24 sps:$4 sm:$0xff]   ;;  %s2479_s14 = smul.u32 24, %s3525_s12  ;;  %s2180_s27 = sshll.u32 %s3525_s12, 3 }
  0x13   : > { %1258 = vmatpush1.bf16.msra.mxu0 %v2513_v14  ;;  %v2547_v37 = vld [vmem:[%s3516_s2 + $0x1bc] ss:$24 sps:$4 sm:$0xff]   ;;  %v2550_v39 = vld [vmem:[%s3516_s2 + $0x1b8] ss:$24 sps:$4 sm:$0xff]   ;;  %v2553_v41 = vld [vmem:[%s3516_s2 + $0x1ec] ss:$24 sps:$4 sm:$0xff]   ;;  %s355_s15 = scalar_lea.vmem %s3514_s0, %s2180_s27  ;;  %s368_s18 = scalar_lea.vmem %s3522_s8, %s2180_s27 }
  0x14   : > { %1344 = vmatpush1.bf16.msra.mxu1 %v2514_v15  ;;  %1259 = vmatprep.subr.bf16.mxu0 %v2515_v16  ;;  %v2551_v40 = vld [vmem:[%s3516_s2 + $0x1e4] ss:$24 sps:$4 sm:$0xff]   ;;  %v2555_v42 = vld [vmem:[%s3516_s2 + $0x1e0] ss:$24 sps:$4 sm:$0xff]   ;;  %s2994_s26 = scalar_lea.vmem %s3515_s1, %s2479_s14  ;;  %v2557_v44 = vld [vmem:[%s3516_s2 + $0x214] ss:$24 sps:$4 sm:$0xff]   ;;  %s375_s21 = scalar_lea.vmem %s3523_s9, %s2479_s14 }
  0x15   : > { %1345 = vmatprep.subr.bf16.mxu1 %v2517_v17  ;;  %v2556_v43 = vld [vmem:[%s3516_s2 + $0x1e8] ss:$24 sps:$4 sm:$0xff]   ;;  %v2559_v45 = vld [vmem:[%s3516_s2 + $0x21c] ss:$24 sps:$4 sm:$0xff]   ;;  %v2562_v49 = vld [vmem:[%s3516_s2 + $0x218] ss:$24 sps:$4 sm:$0xff]  }
  0x16   : > { %v379_v46 = vld [vmem:[%s2994_s26 + $0x8] sm:$0xff]  ;;  %v382_v47 = vld [vmem:[%s2994_s26 + $0x20] sm:$0xff]  ;;  %v2571_v56 = vld [vmem:[%s3516_s2 + $0x27c] ss:$24 sps:$4 sm:$0xff]  }
  0x17   : > { %1260 = vmatpush1.bf16.msra.mxu0 %v2519_v18  ;;  %v2561_v48 = vld [vmem:[%s3516_s2 + $0x210] ss:$24 sps:$4 sm:$0xff]   ;;  %v3010_v50 = vpack.c.bf16 %v382_v47, %v379_v46  ;;  %v2563_v51 = vld [vmem:[%s3516_s2 + $0x244] ss:$24 sps:$4 sm:$0xff]   ;;  %v2567_v53 = vld [vmem:[%s3516_s2 + $0x240] ss:$24 sps:$4 sm:$0xff]  }
  0x18   : > { %1346 = vmatpush1.bf16.msra.mxu1 %v2520_v19  ;;  %1261 = vmatprep.subr.bf16.mxu0 %v2521_v20  ;;  %v2565_v52 = vld [vmem:[%s3516_s2 + $0x24c] ss:$24 sps:$4 sm:$0xff]   ;;  %v2568_v54 = vld [vmem:[%s3516_s2 + $0x248] ss:$24 sps:$4 sm:$0xff]   ;;  %v2574_v58 = vld [vmem:[%s3516_s2 + $0x278] ss:$24 sps:$4 sm:$0xff]  }
  0x19   : > { %1347 = vmatprep.subr.bf16.mxu1 %v2523_v21  ;;  %1283 = vmatprep.mubr.bf16.mxu0 %v3010_v50  ;;  %v2569_v55 = vld [vmem:[%s3516_s2 + $0x274] ss:$24 sps:$4 sm:$0xff]   ;;  %v2573_v57 = vld [vmem:[%s3516_s2 + $0x270] ss:$24 sps:$4 sm:$0xff]   ;;  %v2575_v59 = vld [vmem:[%s3516_s2 + $0x2a4] ss:$24 sps:$4 sm:$0xff]  }
  0x1a   : > { %1369 = vmatprep.mubr.bf16.mxu1 %v3010_v50  ;;  %v2577_v60 = vld [vmem:[%s3516_s2 + $0x2ac] ss:$24 sps:$4 sm:$0xff]   ;;  %v2579_v61 = vld [vmem:[%s3516_s2 + $0x2a0] ss:$24 sps:$4 sm:$0xff]   ;;  %v2583_v0 = vld [vmem:[%s3516_s2 + $0x2dc] ss:$24 sps:$4 sm:$0xff]  }
  0x1b   : > { %1262 = vmatpush1.bf16.msra.mxu0 %v2525_v22  ;;  %v2580_v62 = vld [vmem:[%s3516_s2 + $0x2a8] ss:$24 sps:$4 sm:$0xff]   ;;  %v2581_v63 = vld [vmem:[%s3516_s2 + $0x2d4] ss:$24 sps:$4 sm:$0xff]   ;;  %v2586_v2 = vld [vmem:[%s3516_s2 + $0x2d8] ss:$24 sps:$4 sm:$0xff]  }
  0x1c   : > { %1348 = vmatpush1.bf16.msra.mxu1 %v2526_v23  ;;  %1263 = vmatprep.subr.bf16.mxu0 %v2527_v24  ;;  %v2585_v1 = vld [vmem:[%s3516_s2 + $0x2d0] ss:$24 sps:$4 sm:$0xff]   ;;  %v2589_v3 = vld [vmem:[%s3516_s2 + $0x304] ss:$24 sps:$4 sm:$0xff]   ;;  %v2587_v7 = vld [vmem:[%s3516_s2 + $0x300] ss:$24 sps:$4 sm:$0xff]  }
  0x1d   : > { %1349 = vmatprep.subr.bf16.mxu1 %v2529_v25  ;;  %v378_v4 = vld [vmem:[%s2994_s26] sm:$0xff]  ;;  %v381_v5 = vld [vmem:[%s2994_s26 + $0x18] sm:$0xff]  ;;  %v2595_v10 = vld [vmem:[%s3516_s2 + $0x334] ss:$24 sps:$4 sm:$0xff]   ;;  %v2791_v18 = vmov 0  }
  0x1e   : > { %v2592_v6 = vld [vmem:[%s3516_s2 + $0x30c] ss:$24 sps:$4 sm:$0xff]   ;;  %v3073_v8 = vpack.c.bf16 %v381_v5, %v378_v4  ;;  %v2590_v9 = vld [vmem:[%s3516_s2 + $0x308] ss:$24 sps:$4 sm:$0xff]   ;;  %v2598_v11 = vld [vmem:[%s3516_s2 + $0x33c] ss:$24 sps:$4 sm:$0xff]  }
  0x1f   : > { %1264 = vmatpush1.bf16.msra.mxu0 %v2531_v26  ;;  %v2593_v12 = vld [vmem:[%s3516_s2 + $0x330] ss:$24 sps:$4 sm:$0xff]   ;;  %v2601_v14 = vld [vmem:[%s3516_s2 + $0x364] ss:$24 sps:$4 sm:$0xff]   ;;  %v2599_v16 = vld [vmem:[%s3516_s2 + $0x360] ss:$24 sps:$4 sm:$0xff]  }
  0x20   : > { %1350 = vmatpush1.bf16.msra.mxu1 %v2532_v27  ;;  %1265 = vmatprep.subr.bf16.mxu0 %v2533_v28  ;;  %v2596_v13 = vld [vmem:[%s3516_s2 + $0x338] ss:$24 sps:$4 sm:$0xff]   ;;  %v2604_v15 = vld [vmem:[%s3516_s2 + $0x36c] ss:$24 sps:$4 sm:$0xff]   ;;  %v2602_v17 = vld [vmem:[%s3516_s2 + $0x368] ss:$24 sps:$4 sm:$0xff]  }
  0x21   : > { %1351 = vmatprep.subr.bf16.mxu1 %v2535_v29  ;;  %v2607_v19 = vld [vmem:[%s3516_s2 + $0x394] ss:$24 sps:$4 sm:$0xff]   ;;  %v2605_v21 = vld [vmem:[%s3516_s2 + $0x390] ss:$24 sps:$4 sm:$0xff]   ;;  %v2613_v23 = vld [vmem:[%s3516_s2 + $0x3c4] ss:$24 sps:$4 sm:$0xff]  }
  0x22   : > { %v2610_v20 = vld [vmem:[%s3516_s2 + $0x39c] ss:$24 sps:$4 sm:$0xff]   ;;  %v2608_v22 = vld [vmem:[%s3516_s2 + $0x398] ss:$24 sps:$4 sm:$0xff]   ;;  %v2616_v24 = vld [vmem:[%s3516_s2 + $0x3cc] ss:$24 sps:$4 sm:$0xff]  }
  0x23   : > { %1266 = vmatpush1.bf16.msra.mxu0 %v2537_v30  ;;  %v2611_v25 = vld [vmem:[%s3516_s2 + $0x3c0] ss:$24 sps:$4 sm:$0xff]   ;;  %v2619_v27 = vld [vmem:[%s3516_s2 + $0x3f4] ss:$24 sps:$4 sm:$0xff]   ;;  %v2617_v29 = vld [vmem:[%s3516_s2 + $0x3f0] ss:$24 sps:$4 sm:$0xff]  }
  0x24   : > { %1352 = vmatpush1.bf16.msra.mxu1 %v2538_v31  ;;  %1267 = vmatprep.subr.bf16.mxu0 %v2539_v32  ;;  %v2614_v26 = vld [vmem:[%s3516_s2 + $0x3c8] ss:$24 sps:$4 sm:$0xff]   ;;  %v2622_v28 = vld [vmem:[%s3516_s2 + $0x3fc] ss:$24 sps:$4 sm:$0xff]   ;;  %v2620_v30 = vld [vmem:[%s3516_s2 + $0x3f8] ss:$24 sps:$4 sm:$0xff]  }
  0x25   : > { %1353 = vmatprep.subr.bf16.mxu1 %v2541_v33  ;;  %v2625_v31 = vld [vmem:[%s3516_s2 + $0x424] ss:$24 sps:$4 sm:$0xff]   ;;  %v2623_v33 = vld [vmem:[%s3516_s2 + $0x420] ss:$24 sps:$4 sm:$0xff]   ;;  %v2675_v4 = vld [vmem:[%s3516_s2 + $0x190] ss:$24 sps:$4 sm:$0xff]  }
  0x26   : > { %v2628_v32 = vld [vmem:[%s3516_s2 + $0x42c] ss:$24 sps:$4 sm:$0xff]   ;;  %v2638_v46 = vld [vmem:[%s3518_s4 + $0x18] sm:$0xff]  }
  0x27   : > { %1268 = vmatpush1.bf16.msra.mxu0 %v2543_v34  ;;  %v2626_v34 = vld [vmem:[%s3516_s2 + $0x428] ss:$24 sps:$4 sm:$0xff]   ;;  %v2680_v5 = vld [vmem:[%s3516_s2 + $0x1c4] ss:$24 sps:$4 sm:$0xff]  }
  0x28   : > { %1354 = vmatpush1.bf16.msra.mxu1 %v2544_v35  ;;  %1269 = vmatprep.subr.bf16.mxu0 %v2545_v36  ;;  %v2631_v35 = vld [vmem:[%s3516_s2 + $0x454] ss:$24 sps:$4 sm:$0xff]   ;;  %v2639_v47 = vld [vmem:[%s3518_s4 + $0x20] sm:$0xff]  }
  0x29   : > { %1355 = vmatprep.subr.bf16.mxu1 %v2547_v37  ;;  %v2634_v36 = vld [vmem:[%s3516_s2 + $0x45c] ss:$24 sps:$4 sm:$0xff]   ;;  %v2629_v37 = vld [vmem:[%s3516_s2 + $0x450] ss:$24 sps:$4 sm:$0xff]  }
  0x2b   : > { %1270 = vmatpush1.bf16.msra.mxu0 %v2549_v38  ;;  %v2632_v38 = vld [vmem:[%s3516_s2 + $0x458] ss:$24 sps:$4 sm:$0xff]  }
  0x2c   : > { %1356 = vmatpush1.bf16.msra.mxu1 %v2550_v39  ;;  %1271 = vmatprep.subr.bf16.mxu0 %v2551_v40  ;;  %v380_v39 = vld [vmem:[%s2994_s26 + $0x10] sm:$0xff]  ;;  %v383_v40 = vld [vmem:[%s2994_s26 + $0x28] sm:$0xff] }
  0x2d   : > { %1357 = vmatprep.subr.bf16.mxu1 %v2553_v41  ;;  %v2635_v41 = vld [vmem:[%s3518_s4] sm:$0xff]  }
  0x2f   : > { %1272 = vmatpush1.bf16.msra.mxu0 %v2555_v42  ;;  %v3171_v42 = vpack.c.bf16 %v383_v40, %v380_v39 }
  0x30   : > { %1358 = vmatpush1.bf16.msra.mxu1 %v2556_v43  ;;  %1273 = vmatprep.subr.bf16.mxu0 %v2557_v44  ;;  %v2792_v43 = vmov 0.0   ;;  %v2636_v44 = vld [vmem:[%s3518_s4 + $0x8] sm:$0xff]  }
  0x31   : > { %1359 = vmatprep.subr.bf16.mxu1 %v2559_v45  ;;  %v2637_v45 = vld [vmem:[%s3518_s4 + $0x10] sm:$0xff]  }
  0x33   : > { %1274 = vmatpush1.bf16.msra.mxu0 %v2561_v48  ;;  %v2640_v48 = vld [vmem:[%s3518_s4 + $0x28] sm:$0xff]  }
  0x34   : > { %1360 = vmatpush1.bf16.msra.mxu1 %v2562_v49  ;;  %1275 = vmatprep.subr.bf16.mxu0 %v2563_v51  ;;  %v2641_v49 = vld [vmem:[%s3518_s4 + $0x30] sm:$0xff]  }
  0x35   : > { %1361 = vmatprep.subr.bf16.mxu1 %v2565_v52  ;;  %v2651_v51 = vld [vmem:[%s3516_s2 + $0x10] ss:$24 sps:$4 sm:$0xff]   ;;  %v2653_v52 = vld [vmem:[%s3516_s2 + $0x14] ss:$24 sps:$4 sm:$0xff]  }
  0x37   : > { %1276 = vmatpush1.bf16.msra.mxu0 %v2567_v53  ;;  %v2656_v53 = vld [vmem:[%s3516_s2 + $0x44] ss:$24 sps:$4 sm:$0xff]  }
  0x38   : > { %1362 = vmatpush1.bf16.msra.mxu1 %v2568_v54  ;;  %1277 = vmatprep.subr.bf16.mxu0 %v2569_v55  ;;  %v2654_v54 = vld [vmem:[%s3516_s2 + $0x40] ss:$24 sps:$4 sm:$0xff]   ;;  %v2659_v55 = vld [vmem:[%s3516_s2 + $0x74] ss:$24 sps:$4 sm:$0xff]  }
  0x39   : > { %1363 = vmatprep.subr.bf16.mxu1 %v2571_v56  ;;  %v2657_v56 = vld [vmem:[%s3516_s2 + $0x70] ss:$24 sps:$4 sm:$0xff]  }
  0x3b   : > { %1278 = vmatpush1.bf16.msra.mxu0 %v2573_v57  ;;  %v2662_v57 = vld [vmem:[%s3516_s2 + $0xa4] ss:$24 sps:$4 sm:$0xff]  }
  0x3c   : > { %1364 = vmatpush1.bf16.msra.mxu1 %v2574_v58  ;;  %1279 = vmatprep.subr.bf16.mxu0 %v2575_v59  ;;  %v2660_v58 = vld [vmem:[%s3516_s2 + $0xa0] ss:$24 sps:$4 sm:$0xff]   ;;  %v2665_v59 = vld [vmem:[%s3516_s2 + $0xd4] ss:$24 sps:$4 sm:$0xff]  }
  0x3d   : > { %1365 = vmatprep.subr.bf16.mxu1 %v2577_v60  ;;  %v2663_v60 = vld [vmem:[%s3516_s2 + $0xd0] ss:$24 sps:$4 sm:$0xff]  }
  0x3f   : > { %1280 = vmatpush1.bf16.msra.mxu0 %v2579_v61  ;;  %v2668_v61 = vld [vmem:[%s3516_s2 + $0x104] ss:$24 sps:$4 sm:$0xff]  }
  0x40   : > { %1366 = vmatpush1.bf16.msra.mxu1 %v2580_v62  ;;  %1281 = vmatprep.subr.bf16.mxu0 %v2581_v63  ;;  %v2666_v62 = vld [vmem:[%s3516_s2 + $0x100] ss:$24 sps:$4 sm:$0xff]   ;;  %v2671_v63 = vld [vmem:[%s3516_s2 + $0x134] ss:$24 sps:$4 sm:$0xff]  }
  0x41   : > { %1367 = vmatprep.subr.bf16.mxu1 %v2583_v0  ;;  %v2669_v0 = vld [vmem:[%s3516_s2 + $0x130] ss:$24 sps:$4 sm:$0xff]  }
  0x43   : > { %1282 = vmatpush1.bf16.msra.mxu0 %v2585_v1  ;;  %v2674_v1 = vld [vmem:[%s3516_s2 + $0x164] ss:$24 sps:$4 sm:$0xff]  }
  0x44   : > { %1368 = vmatpush1.bf16.msra.mxu1 %v2586_v2  ;;  %1294 = vmatprep.subr.bf16.mxu0 %v2589_v3  ;;  %v2672_v2 = vld [vmem:[%s3516_s2 + $0x160] ss:$24 sps:$4 sm:$0xff]   ;;  %v2677_v3 = vld [vmem:[%s3516_s2 + $0x194] ss:$24 sps:$4 sm:$0xff]  }
  0x45   : > { %1380 = vmatprep.subr.bf16.mxu1 %v2592_v6  ;;  %v2678_v6 = vld [vmem:[%s3516_s2 + $0x1c0] ss:$24 sps:$4 sm:$0xff]  }
  0x46   : > { %1284 = vmatmul.mubr.bf16.vlgmr.msra.gmra.mrb[0].mxu0 %v3073_v8 }
  0x47   : > { %1370 = vmatmul.mubr.bf16.vlgmr.msra.gmra.mrb[0].mxu1 %v3073_v8  ;;  %1295 = vmatpush1.bf16.msra.mxu0 %v2587_v7  ;;  %v2683_v7 = vld [vmem:[%s3516_s2 + $0x1f4] ss:$24 sps:$4 sm:$0xff]  }
  0x48   : > { %1381 = vmatpush1.bf16.msra.mxu1 %v2590_v9  ;;  %1296 = vmatprep.subr.bf16.mxu0 %v2595_v10  ;;  %v2681_v9 = vld [vmem:[%s3516_s2 + $0x1f0] ss:$24 sps:$4 sm:$0xff]   ;;  %v2686_v10 = vld [vmem:[%s3516_s2 + $0x224] ss:$24 sps:$4 sm:$0xff]  }
  0x49   : > { %1382 = vmatprep.subr.bf16.mxu1 %v2598_v11  ;;  %1326 = vmatprep.mubr.bf16.mxu0 %v2791_v18  ;;  %v2684_v11 = vld [vmem:[%s3516_s2 + $0x220] ss:$24 sps:$4 sm:$0xff]  }
  0x4a   : > { %1412 = vmatprep.mubr.bf16.mxu1 %v2791_v18 }
  0x4b   : > { %1297 = vmatpush1.bf16.msra.mxu0 %v2593_v12  ;;  %v2689_v12 = vld [vmem:[%s3516_s2 + $0x254] ss:$24 sps:$4 sm:$0xff]  }
  0x4c   : > { %1383 = vmatpush1.bf16.msra.mxu1 %v2596_v13  ;;  %1298 = vmatprep.subr.bf16.mxu0 %v2601_v14  ;;  %v2687_v13 = vld [vmem:[%s3516_s2 + $0x250] ss:$24 sps:$4 sm:$0xff]   ;;  %v2692_v14 = vld [vmem:[%s3516_s2 + $0x284] ss:$24 sps:$4 sm:$0xff]  }
  0x4d   : > { %1384 = vmatprep.subr.bf16.mxu1 %v2604_v15  ;;  %v2690_v15 = vld [vmem:[%s3516_s2 + $0x280] ss:$24 sps:$4 sm:$0xff]  }
  0x4f   : > { %1299 = vmatpush1.bf16.msra.mxu0 %v2599_v16  ;;  %v2695_v16 = vld [vmem:[%s3516_s2 + $0x2b4] ss:$24 sps:$4 sm:$0xff]  }
  0x50   : > { %1385 = vmatpush1.bf16.msra.mxu1 %v2602_v17  ;;  %1300 = vmatprep.subr.bf16.mxu0 %v2607_v19  ;;  %v2693_v17 = vld [vmem:[%s3516_s2 + $0x2b0] ss:$24 sps:$4 sm:$0xff]   ;;  %v2698_v19 = vld [vmem:[%s3516_s2 + $0x2e4] ss:$24 sps:$4 sm:$0xff]  }
  0x51   : > { %1386 = vmatprep.subr.bf16.mxu1 %v2610_v20  ;;  %v2696_v20 = vld [vmem:[%s3516_s2 + $0x2e0] ss:$24 sps:$4 sm:$0xff]  }
  0x53   : > { %1301 = vmatpush1.bf16.msra.mxu0 %v2605_v21  ;;  %v2701_v21 = vld [vmem:[%s3516_s2 + $0x314] ss:$24 sps:$4 sm:$0xff]  }
  0x54   : > { %1387 = vmatpush1.bf16.msra.mxu1 %v2608_v22  ;;  %1302 = vmatprep.subr.bf16.mxu0 %v2613_v23  ;;  %v2699_v22 = vld [vmem:[%s3516_s2 + $0x310] ss:$24 sps:$4 sm:$0xff]   ;;  %v2704_v23 = vld [vmem:[%s3516_s2 + $0x344] ss:$24 sps:$4 sm:$0xff]  }
  0x55   : > { %1388 = vmatprep.subr.bf16.mxu1 %v2616_v24  ;;  %v2702_v24 = vld [vmem:[%s3516_s2 + $0x340] ss:$24 sps:$4 sm:$0xff]  }
  0x57   : > { %1303 = vmatpush1.bf16.msra.mxu0 %v2611_v25  ;;  %v2707_v25 = vld [vmem:[%s3516_s2 + $0x374] ss:$24 sps:$4 sm:$0xff]  }
  0x58   : > { %1389 = vmatpush1.bf16.msra.mxu1 %v2614_v26  ;;  %1304 = vmatprep.subr.bf16.mxu0 %v2619_v27 }
  0x59   : > { %1390 = vmatprep.subr.bf16.mxu1 %v2622_v28 }
  0x5b   : > { %1305 = vmatpush1.bf16.msra.mxu0 %v2617_v29 }
  0x5c   : > { %1391 = vmatpush1.bf16.msra.mxu1 %v2620_v30  ;;  %1306 = vmatprep.subr.bf16.mxu0 %v2625_v31 }
  0x5d   : > { %1392 = vmatprep.subr.bf16.mxu1 %v2628_v32 }
  0x5f   : > { %1307 = vmatpush1.bf16.msra.mxu0 %v2623_v33  ;;  %v2705_v33 = vld [vmem:[%s3516_s2 + $0x370] ss:$24 sps:$4 sm:$0xff]  }
  0x60   : > { %1393 = vmatpush1.bf16.msra.mxu1 %v2626_v34  ;;  %1308 = vmatprep.subr.bf16.mxu0 %v2631_v35 }
  0x61   : > { %1394 = vmatprep.subr.bf16.mxu1 %v2634_v36 }
  0x63   : > { %1309 = vmatpush1.bf16.msra.mxu0 %v2629_v37  ;;  %v2710_v37 = vld [vmem:[%s3516_s2 + $0x3a4] ss:$24 sps:$4 sm:$0xff]  }
  0x64   : > { %1395 = vmatpush1.bf16.msra.mxu1 %v2632_v38  ;;  %1423 = vmatprep.subr.bf16.mxu0 %v2653_v52  ;;  %v2719_v52 = vld [vmem:[%s3516_s2 + $0x434] ss:$24 sps:$4 sm:$0xff]  }
  0x65   : > { %2407 = vmatprep.subr.bf16.mxu1 %v2792_v43 }
  0x66   : > { %1327 = vmatmul.mubr.bf16.vlgmr.msra.gmra.mrb[0].mxu0 %v3171_v42 }
  0x67   : > { %1413 = vmatmul.mubr.bf16.vlgmr.msra.gmra.mrb[0].mxu1 %v3171_v42  ;;  %1455 = vmatprep.mubr.bf16.mxu0 %v3010_v50  ;;  %v2642_v50 = vld [vmem:[%s3518_s4 + $0x38] sm:$0xff]  }
  0x68   : > { %2408 = vmatpush3.bf16.msra.mxu1 %v2635_v41  ;;  %2423 = vmatprep.mubr.msk.bf16.mxu1 %vm2793_vm0, %v2792_v43 }
  0x69   : > { %2409 = vmatprep.subr.bf16.mxu1 %v2792_v43  ;;  %1424 = vmatpush1.bf16.msra.mxu0 %v2651_v51  ;;  %v2714_v51 = vld [vmem:[%s3516_s2 + $0x400] ss:$24 sps:$4 sm:$0xff]  }
  0x6a   : > { %1425 = vmatprep.subr.bf16.mxu0 %v2656_v53 }
  0x6c   : > { %2410 = vmatpush3.bf16.msra.mxu1 %v2636_v44 }
  0x6d   : > { %2411 = vmatprep.subr.bf16.mxu1 %v2792_v43  ;;  %1426 = vmatpush1.bf16.msra.mxu0 %v2654_v54  ;;  %v2717_v54 = vld [vmem:[%s3516_s2 + $0x430] ss:$24 sps:$4 sm:$0xff]  }
  0x6e   : > { %1427 = vmatprep.subr.bf16.mxu0 %v2659_v55 }
  0x70   : > { %2412 = vmatpush3.bf16.msra.mxu1 %v2637_v45 }
  0x71   : > { %2413 = vmatprep.subr.bf16.mxu1 %v2792_v43  ;;  %1428 = vmatpush1.bf16.msra.mxu0 %v2657_v56  ;;  %v2722_v56 = vld [vmem:[%s3516_s2 + $0x464] ss:$24 sps:$4 sm:$0xff]  }
  0x72   : > { %1429 = vmatprep.subr.bf16.mxu0 %v2662_v57 }
  0x74   : > { %2414 = vmatpush3.bf16.msra.mxu1 %v2638_v46  ;;  %v2708_v46 = vld [vmem:[%s3516_s2 + $0x3a0] ss:$24 sps:$4 sm:$0xff]  }
  0x75   : > { %2415 = vmatprep.subr.bf16.mxu1 %v2792_v43  ;;  %1430 = vmatpush1.bf16.msra.mxu0 %v2660_v58 }
  0x76   : > { %1431 = vmatprep.subr.bf16.mxu0 %v2665_v59 }
  0x78   : > { %2416 = vmatpush3.bf16.msra.mxu1 %v2639_v47  ;;  %v2713_v47 = vld [vmem:[%s3516_s2 + $0x3d4] ss:$24 sps:$4 sm:$0xff]  }
  0x79   : > { %2417 = vmatprep.subr.bf16.mxu1 %v2792_v43  ;;  %1432 = vmatpush1.bf16.msra.mxu0 %v2663_v60 }
  0x7a   : > { %1433 = vmatprep.subr.bf16.mxu0 %v2668_v61 }
  0x7c   : > { %2418 = vmatpush3.bf16.msra.mxu1 %v2640_v48 }
  0x7d   : > { %2419 = vmatprep.subr.bf16.mxu1 %v2792_v43  ;;  %1434 = vmatpush1.bf16.msra.mxu0 %v2666_v62  ;;  %v2720_v62 = vld [vmem:[%s3516_s2 + $0x460] ss:$24 sps:$4 sm:$0xff]  }
  0x7e   : > { %1435 = vmatprep.subr.bf16.mxu0 %v2671_v63 }
  0x80   : > { %2420 = vmatpush3.bf16.msra.mxu1 %v2641_v49  ;;  %v2711_v49 = vld [vmem:[%s3516_s2 + $0x3d0] ss:$24 sps:$4 sm:$0xff]  }
  0x81   : > { %2421 = vmatprep.subr.bf16.mxu1 %v2792_v43  ;;  %1436 = vmatpush1.bf16.msra.mxu0 %v2669_v0 }
  0x82   : > { %1437 = vmatprep.subr.bf16.mxu0 %v2674_v1 }
  0x84   : > { %2422 = vmatpush3.bf16.msra.mxu1 %v2642_v50  ;;  %v2716_v50 = vld [vmem:[%s3516_s2 + $0x404] ss:$24 sps:$4 sm:$0xff]  }
  0x85   : > { %2427 = vmatprep.subr.bf16.mxu1 %v2792_v43  ;;  %1438 = vmatpush1.bf16.msra.mxu0 %v2672_v2  ;;  %v2643_v2 = vld [vmem:[%s3517_s3] sm:$0xff]  }
  0x86   : > { %1439 = vmatprep.subr.bf16.mxu0 %v2677_v3 }
  0x89   : > { %1440 = vmatpush1.bf16.msra.mxu0 %v2675_v4  ;;  %v2644_v4 = vld [vmem:[%s3517_s3 + $0x8] sm:$0xff]  }
  0x8a   : > { %1441 = vmatprep.subr.bf16.mxu0 %v2680_v5  ;;  %v2645_v5 = vld [vmem:[%s3517_s3 + $0x10] sm:$0xff]  }
  0x8d   : > { %1442 = vmatpush1.bf16.msra.mxu0 %v2678_v6  ;;  %v2646_v6 = vld [vmem:[%s3517_s3 + $0x18] sm:$0xff]  }
  0x8e   : > { %1443 = vmatprep.subr.bf16.mxu0 %v2683_v7  ;;  %v2648_v7 = vld [vmem:[%s3517_s3 + $0x28] sm:$0xff]  }
  0x91   : > { %1444 = vmatpush1.bf16.msra.mxu0 %v2681_v9  ;;  %v2649_v9 = vld [vmem:[%s3517_s3 + $0x30] sm:$0xff]  }
  0x92   : > { %1445 = vmatprep.subr.bf16.mxu0 %v2686_v10  ;;  %v2650_v10 = vld [vmem:[%s3517_s3 + $0x38] sm:$0xff]  }
  0x95   : > { %1446 = vmatpush1.bf16.msra.mxu0 %v2684_v11  ;;  %v1533_v11 = vld [vmem:[%s355_s15] sm:$0xff] }
  0x96   : > { %1447 = vmatprep.subr.bf16.mxu0 %v2689_v12  ;;  %v1534_v12 = vld [vmem:[%s355_s15 + $0x8] sm:$0xff] }
  0x99   : > { %1448 = vmatpush1.bf16.msra.mxu0 %v2687_v13  ;;  %v1535_v13 = vpack.c.bf16 %v1534_v12, %v1533_v11 }
  0x9a   : > { %1449 = vmatprep.subr.bf16.mxu0 %v2692_v14  ;;  %v2723_v14 = vld [vmem:[%s3520_s6] ss:$12 sps:$4 sm:$0xff]  }
  0x9d   : > { %1450 = vmatpush1.bf16.msra.mxu0 %v2690_v15  ;;  %v2725_v15 = vld [vmem:[%s3520_s6 + $0x4] ss:$12 sps:$4 sm:$0xff]  }
  0x9e   : > { %1451 = vmatprep.subr.bf16.mxu0 %v2695_v16  ;;  %v2726_v16 = vld [vmem:[%s3520_s6 + $0x8] ss:$12 sps:$4 sm:$0xff]  }
  0xa1   : > { %1452 = vmatpush1.bf16.msra.mxu0 %v2693_v17  ;;  %v2729_v17 = vld [vmem:[%s3520_s6 + $0x1c] ss:$12 sps:$4 sm:$0xff]  }
  0xa2   : > { %1453 = vmatprep.subr.bf16.mxu0 %v2698_v19  ;;  %v2727_v19 = vld [vmem:[%s3520_s6 + $0x18] ss:$12 sps:$4 sm:$0xff]  }
  0xa5   : > { %1454 = vmatpush1.bf16.msra.mxu0 %v2696_v20  ;;  %v2733_v20 = vld [vmem:[%s3520_s6 + $0x34] ss:$12 sps:$4 sm:$0xff]  }
  0xa6   : > { %1466 = vmatprep.subr.bf16.mxu0 %v2701_v21  ;;  %v2734_v21 = vld [vmem:[%s3520_s6 + $0x38] ss:$12 sps:$4 sm:$0xff]  }
  0xa8   : > { %1456 = vmatmul.mubr.bf16.vlgmr.msra.gmra.mrb[4].mxu0 %v3073_v8 }
  0xa9   : > { %1467 = vmatpush1.bf16.msra.mxu0 %v2699_v22  ;;  %1498 = vmatprep.mubr.bf16.mxu0 %v2791_v18  ;;  %v2731_v22 = vld [vmem:[%s3520_s6 + $0x30] ss:$12 sps:$4 sm:$0xff]  }
  0xaa   : > { %1468 = vmatprep.subr.bf16.mxu0 %v2704_v23  ;;  %v2737_v23 = vld [vmem:[%s3520_s6 + $0x4c] ss:$12 sps:$4 sm:$0xff]  }
  0xad   : > { %1469 = vmatpush1.bf16.msra.mxu0 %v2702_v24  ;;  %v2738_v24 = vld [vmem:[%s3520_s6 + $0x50] ss:$12 sps:$4 sm:$0xff]  }
  0xae   : > { %1470 = vmatprep.subr.bf16.mxu0 %v2707_v25  ;;  %v2735_v25 = vld [vmem:[%s3520_s6 + $0x48] ss:$12 sps:$4 sm:$0xff]  }
  0xb1   : > { %1471 = vmatpush1.bf16.msra.mxu0 %v2705_v33  ;;  %v2747_v33 = vld [vmem:[%s3520_s6 + $0x90] ss:$12 sps:$4 sm:$0xff]  }
  0xb2   : > { %1472 = vmatprep.subr.bf16.mxu0 %v2710_v37  ;;  %v2751_v37 = vld [vmem:[%s3520_s6 + $0xa8] ss:$12 sps:$4 sm:$0xff]  }
  0xb5   : > { %1473 = vmatpush1.bf16.msra.mxu0 %v2708_v46 }
  0xb6   : > { %1474 = vmatprep.subr.bf16.mxu0 %v2713_v47 }
  0xb9   : > { %1475 = vmatpush1.bf16.msra.mxu0 %v2711_v49  ;;  %v2347_v49 = vld [vmem:[%s3519_s5] ss:$0 sm:$0xff] }
  0xba   : > { %1476 = vmatprep.subr.bf16.mxu0 %v2716_v50 }
  0xbd   : > { %1477 = vmatpush1.bf16.msra.mxu0 %v2714_v51 }
  0xbe   : > { %1478 = vmatprep.subr.bf16.mxu0 %v2719_v52 }
  0xc1   : > { %1479 = vmatpush1.bf16.msra.mxu0 %v2717_v54 }
  0xc2   : > { %1480 = vmatprep.subr.bf16.mxu0 %v2722_v56 }
  0xc5   : > { %1481 = vmatpush1.bf16.msra.mxu0 %v2720_v62 }
  0xc6   : > { %2447 = vmatprep.subr.bf16.mxu0 %v2792_v43 }
  0xc8   : > { %1499 = vmatmul.mubr.bf16.vlgmr.msra.gmra.mrb[4].mxu0 %v3171_v42  ;;  %v2647_v42 = vld [vmem:[%s3517_s3 + $0x20] sm:$0xff]  }
  0xc9   : > { %2463 = vmatprep.mubr.msk.bf16.mxu0 %vm2793_vm0, %v2792_v43  ;;  %2448 = vmatpush3.bf16.msra.mxu0 %v2726_v16 }
  0xca   : > { %2449 = vmatprep.subr.bf16.mxu0 %v2792_v43 }
 0x139   : > { %v1328_v26 = vpop.f32.mrb[0].mxu0 }
 0x13a   : > { %v1414_v27 = vpop.f32.mrb[0].mxu1  ;;  %v1509_v28 = vmul.f32 %v1328_v26, %v1328_v26  ;;  %v1330_v29 = vpop.f32.mrb[1].mxu0  ;;  %v2741_v26 = vld [vmem:[%s3520_s6 + $0x64] ss:$12 sps:$4 sm:$0xff]  }
 0x13b   : > { %v3321_v30 = vpop.f32.mrb[1].mxu1  ;;  %v1510_v31 = vmul.f32 %v1330_v29, %v1330_v29  ;;  %v1332_v8 = vpop.f32.mrb[2].mxu0  ;;  %v1511_v38 = vmul.f32 %v1414_v27, %v1414_v27  ;;  %v2742_v27 = vld [vmem:[%s3520_s6 + $0x68] ss:$12 sps:$4 sm:$0xff]  }
 0x13c   : > { %v1418_v32 = vpop.f32.mrb[2].mxu1  ;;  %v1512_v34 = vmul.f32 %v1332_v8, %v1332_v8  ;;  %v1334_v35 = vpop.f32.mrb[3].mxu0  ;;  %v2745_v29 = vld [vmem:[%s3520_s6 + $0x7c] ss:$12 sps:$4 sm:$0xff]   ;;  %v2743_v8 = vld [vmem:[%s3520_s6 + $0x78] ss:$12 sps:$4 sm:$0xff]  }
 0x13d   : > { %v3326_v36 = vpop.f32.mrb[3].mxu1  ;;  %v1515_v39 = vadd.f32 %v1510_v31, %v1509_v28  ;;  %v1513_v40 = vmul.f32 %v1334_v35, %v1334_v35  ;;  %v1514_v44 = vmul.f32 %v1418_v32, %v1418_v32  ;;  %v2739_v28 = vld [vmem:[%s3520_s6 + $0x60] ss:$12 sps:$4 sm:$0xff]  }
 0x13e   : > { %v2746_v31 = vld [vmem:[%s3520_s6 + $0x80] ss:$12 sps:$4 sm:$0xff]  }
 0x13f   : > { %v1517_v41 = vadd.f32 %v1515_v39, %v1511_v38  ;;  %v1516_v45 = vadd.f32 %v1513_v40, %v1512_v34  ;;  %v2749_v32 = vld [vmem:[%s3520_s6 + $0x94] ss:$12 sps:$4 sm:$0xff]   ;;  %v2750_v34 = vld [vmem:[%s3520_s6 + $0x98] ss:$12 sps:$4 sm:$0xff]   ;;  %v2754_v38 = vld [vmem:[%s3520_s6 + $0xb0] ss:$12 sps:$4 sm:$0xff]  }
 0x140   : > { %v2753_v35 = vld [vmem:[%s3520_s6 + $0xac] ss:$12 sps:$4 sm:$0xff]  }
 0x141   : > { %2755 = vrsqrt.f32 %v1517_v41  ;;  %v1518_v48 = vadd.f32 %v1516_v45, %v1514_v44  ;;  %vm1521_vm1 = vcmp.eq.f32.partialorder %v1517_v41, inf  ;;  %v1524_v60 = vand.u32 2147483648, %v1517_v41 }
 0x142   : > { %vm1523_vm3 = vcmp.eq.f32.partialorder %v1517_v41, 0.0 }
 0x143   : > { %2757 = vrsqrt.f32 %v1518_v48  ;;  %vm1528_vm2 = vcmp.eq.f32.partialorder %v1518_v48, inf  ;;  %v1531_v61 = vand.u32 2147483648, %v1518_v48  ;;  %vm1530_vm4 = vcmp.eq.f32.partialorder %v1518_v48, 0.0 }
 0x14b   : > { %v2756_v53 = vpop.eup %2755 }
 0x14c   : > { %v1520_v55 = vmul.f32 %v2756_v53, %v1517_v41 }
 0x14d   : > { %v2758_v57 = vpop.eup %2757 }
 0x14e   : > { %v1522_v58 = vsel %vm1521_vm1, %v1517_v41, %v1520_v55  ;;  %v1527_v59 = vmul.f32 %v2758_v57, %v1518_v48 }
 0x14f   : > { %v1525_v0 = vsel %vm1523_vm3, %v1524_v60, %v1522_v58  ;;  %v1791_v60 = vlaneseq }
 0x150   : > { %v1529_v63 = vsel %vm1528_vm2, %v1518_v48, %v1527_v59 }
 0x151   : > { %v1532_v1 = vsel %vm1530_vm4, %v1531_v61, %v1529_v63  ;;  %v1792_v61 = vshrl.u32 %v1791_v60, 7 }
 0x152   : > { %v1552_v3 = vpack.c.bf16 %v1532_v1, %v1525_v0  ;;  %v1789_v0 = vld [vmem:[%s3521_s7] sm:$0x7] }
 0x153   : > { %v1793_v62 = vsub.s32 0, %v1792_v61  ;;  %v1801_v63 = vsub.s32 2, %v1792_v61  ;;  %v1797_v1 = vsub.s32 1, %v1792_v61 }
 0x154   : > { %2424 = vmatmul.mubr.bf16.vlgmr.msra.gmra.mrb[4].mxu1 %v1552_v3 }
 0x155   : > { %2428 = vmatpush3.bf16.msra.mxu1 %v2643_v2  ;;  %2443 = vmatprep.mubr.msk.bf16.mxu1 %vm2793_vm0, %v2792_v43  ;;  %v1794_v2 = vrot.slane %v1789_v0, %v1793_v62  ;;  %v1802_v3 = vrot.slane %v1789_v0, %v1801_v63 }
 0x156   : > { %2429 = vmatprep.subr.bf16.mxu1 %v2792_v43 }
 0x159   : > { %2430 = vmatpush3.bf16.msra.mxu1 %v2644_v4  ;;  %v1798_v4 = vrot.slane %v1789_v0, %v1797_v1 }
 0x15a   : > { %2431 = vmatprep.subr.bf16.mxu1 %v2792_v43 }
 0x15d   : > { %2432 = vmatpush3.bf16.msra.mxu1 %v2645_v5 }
 0x15e   : > { %2433 = vmatprep.subr.bf16.mxu1 %v2792_v43 }
 0x161   : > { %2434 = vmatpush3.bf16.msra.mxu1 %v2646_v6 }
 0x162   : > { %2435 = vmatprep.subr.bf16.mxu1 %v2792_v43 }
 0x165   : > { %2436 = vmatpush3.bf16.msra.mxu1 %v2647_v42 }
 0x166   : > { %2437 = vmatprep.subr.bf16.mxu1 %v2792_v43 }
 0x169   : > { %2438 = vmatpush3.bf16.msra.mxu1 %v2648_v7 }
 0x16a   : > { %2439 = vmatprep.subr.bf16.mxu1 %v2792_v43 }
 0x16d   : > { %2440 = vmatpush3.bf16.msra.mxu1 %v2649_v9 }
 0x16e   : > { %2441 = vmatprep.subr.bf16.mxu1 %v2792_v43 }
 0x171   : > { %2442 = vmatpush3.bf16.msra.mxu1 %v2650_v10 }
 0x172   : > { %1934 = vmatprep.subr.bf16.mxu1 %v2725_v15 }
 0x174   : > { %2444 = vmatmul.mubr.bf16.vlgmr.msra.gmra.mrb[8].mxu1 %v1535_v13 }
 0x175   : > { %1966 = vmatprep.mubr.bf16.mxu1 %v2791_v18  ;;  %v2730_v18 = vld [vmem:[%s3520_s6 + $0x20] ss:$12 sps:$4 sm:$0xff]   ;;  %1935 = vmatpush1.bf16.msra.mxu1 %v2723_v14 }
 0x176   : > { %1936 = vmatprep.subr.bf16.mxu1 %v2729_v17  ;;  %2450 = vmatpush3.bf16.msra.mxu0 %v2730_v18 }
 0x177   : > { %2451 = vmatprep.subr.bf16.mxu0 %v2792_v43 }
 0x179   : > { %1937 = vmatpush1.bf16.msra.mxu1 %v2727_v19 }
 0x17a   : > { %1938 = vmatprep.subr.bf16.mxu1 %v2733_v20  ;;  %2452 = vmatpush3.bf16.msra.mxu0 %v2734_v21 }
 0x17b   : > { %2453 = vmatprep.subr.bf16.mxu0 %v2792_v43 }
 0x17d   : > { %1939 = vmatpush1.bf16.msra.mxu1 %v2731_v22 }
 0x17e   : > { %1940 = vmatprep.subr.bf16.mxu1 %v2737_v23  ;;  %2454 = vmatpush3.bf16.msra.mxu0 %v2738_v24 }
 0x17f   : > { %2455 = vmatprep.subr.bf16.mxu0 %v2792_v43 }
 0x181   : > { %1941 = vmatpush1.bf16.msra.mxu1 %v2735_v25 }
 0x182   : > { %1942 = vmatprep.subr.bf16.mxu1 %v2741_v26  ;;  %2456 = vmatpush3.bf16.msra.mxu0 %v2742_v27 }
 0x183   : > { %2457 = vmatprep.subr.bf16.mxu0 %v2792_v43 }
 0x185   : > { %1943 = vmatpush1.bf16.msra.mxu1 %v2739_v28 }
 0x186   : > { %1944 = vmatprep.subr.bf16.mxu1 %v2745_v29  ;;  %2458 = vmatpush3.bf16.msra.mxu0 %v2746_v31 }
 0x187   : > { %2459 = vmatprep.subr.bf16.mxu0 %v2792_v43 }
 0x189   : > { %1945 = vmatpush1.bf16.msra.mxu1 %v2743_v8 }
 0x18a   : > { %1946 = vmatprep.subr.bf16.mxu1 %v2749_v32  ;;  %2460 = vmatpush3.bf16.msra.mxu0 %v2750_v34 }
 0x18b   : > { %2461 = vmatprep.subr.bf16.mxu0 %v2792_v43 }
 0x18d   : > { %1947 = vmatpush1.bf16.msra.mxu1 %v2747_v33 }
 0x18e   : > { %1948 = vmatprep.subr.bf16.mxu1 %v2753_v35  ;;  %2462 = vmatpush3.bf16.msra.mxu0 %v2754_v38 }
 0x191   : > { %1949 = vmatpush1.bf16.msra.mxu1 %v2751_v37 }
 0x19b   : > { %v3481_v44 = vpop.f32.mrb[4].mxu0 }
 0x19c   : > { %v3483_v46 = vpop.f32.mrb[5].mxu0 }
 0x19d   : > { %v3485_v43 = vpop.f32.mrb[6].mxu0 }
 0x19e   : > { %v3487_v47 = vpop.f32.mrb[7].mxu0 }
 0x227   : > { %v1651_v39 = vpop.f32.mrb[4].mxu1 }
 0x228   : > { %v2425_v40 = vpop.f32.mrb[5].mxu1 }
 0x229   : > { %v1654_v41 = vpop.f32.mrb[6].mxu1 }
 0x22a   : > { %v2426_v45 = vpop.f32.mrb[7].mxu1 }
 0x247   : > { %v1740_v48 = vpop.f32.mrb[8].mxu1 }
 0x248   : > { %v1741_v50 = vadd.f32 %v1740_v48, %v1651_v39  ;;  %v2445_v51 = vpop.f32.mrb[9].mxu1 }
 0x249   : > { %v1743_v52 = vpop.f32.mrb[10].mxu1 }
 0x24a   : > { %v1754_v53 = vadd.f32 %v2347_v49, %v1741_v50  ;;  %v1744_v54 = vadd.f32 %v1743_v52, %v1654_v41  ;;  %v2446_v55 = vpop.f32.mrb[11].mxu1 }
 0x24c   : > { %v2054_v56 = vmax.f32 %v1754_v53, 0.0  ;;  %v1755_v57 = vadd.f32 %v2347_v49, %v1744_v54 }
 0x24e   : > { %2056 = vst [vmem:[%s368_s18] sm:$0xff] %v2054_v56  ;;  %v1756_v58 = vpack.c.bf16 %v1755_v57, %v1754_v53  ;;  %v2055_v59 = vmax.f32 %v1755_v57, 0.0 }
 0x250   : > { %2057 = vst [vmem:[%s368_s18 + $0x8] sm:$0xff] %v2055_v59  ;;  %1967 = vmatmul.mubr.bf16.vlgmr.msra.gmra.mrb[12].mxu1 %v1756_v58  ;;  %2464 = vmatmul.mubr.bf16.vlgmr.msra.gmra.mrb[8].mxu0 %v1756_v58 }
 0x323   : > { %v1968_v5 = vpop.f32.mrb[12].mxu1  ;;  %v2011_v6 = vpop.f32.mrb[8].mxu0 }
 0x324   : > { %v1969_v42 = vadd.f32 %v1968_v5, %v1794_v2  ;;  %v2012_v7 = vadd.f32 %v2011_v6, %v1802_v3  ;;  %v1970_v9 = vpop.f32.mrb[13].mxu1  ;;  %v2465_v10 = vpop.f32.mrb[9].mxu0 }
 0x325   : > { %v1971_v11 = vadd.f32 %v1970_v9, %v1798_v4  ;;  %v1972_v12 = vpop.f32.mrb[14].mxu1  ;;  %v2014_v13 = vpop.f32.mrb[10].mxu0 }
 0x326   : > { %v2372_v14 = vmul.f32 -1.442695, %v1969_v42  ;;  %v2374_v15 = vmul.f32 -1.442695, %v2012_v7  ;;  %v1973_v16 = vadd.f32 %v1972_v12, %v1794_v2  ;;  %v2015_v17 = vadd.f32 %v2014_v13, %v1802_v3  ;;  %v1974_v18 = vpop.f32.mrb[15].mxu1  ;;  %v2466_v19 = vpop.f32.mrb[11].mxu0 }
 0x327   : > { %v2373_v20 = vmul.f32 -1.442695, %v1971_v11  ;;  %v1975_v21 = vadd.f32 %v1974_v18, %v1798_v4 }
 0x328   : > { %2759 = vpow2.f32 %v2372_v14  ;;  %v2375_v22 = vmul.f32 -1.442695, %v1973_v16  ;;  %v2377_v23 = vmul.f32 -1.442695, %v2015_v17 }
 0x329   : > { %2761 = vpow2.f32 %v2374_v15  ;;  %v2376_v24 = vmul.f32 -1.442695, %v1975_v21 }
 0x32a   : > { %2763 = vpow2.f32 %v2373_v20 }
 0x32b   : > { %2765 = vpow2.f32 %v2375_v22 }
 0x32c   : > { %2767 = vpow2.f32 %v2377_v23 }
 0x32d   : > { %2769 = vpow2.f32 %v2376_v24 }
 0x332   : > { %v2760_v25 = vpop.eup %2759 }
 0x333   : > { %v2762_v26 = vpop.eup %2761  ;;  %v2036_v27 = vadd.f32 1.0, %v2760_v25 }
 0x334   : > { %v2764_v28 = vpop.eup %2763  ;;  %v2038_v29 = vadd.f32 1.0, %v2762_v26 }
 0x335   : > { %v2766_v31 = vpop.eup %2765  ;;  %2771 = vrcp.f32 %v2036_v27  ;;  %v2037_v8 = vadd.f32 1.0, %v2764_v28 }
 0x336   : > { %v2768_v32 = vpop.eup %2767  ;;  %2773 = vrcp.f32 %v2038_v29  ;;  %v2039_v33 = vadd.f32 1.0, %v2766_v31 }
 0x337   : > { %v2770_v34 = vpop.eup %2769  ;;  %2775 = vrcp.f32 %v2037_v8  ;;  %v2041_v35 = vadd.f32 1.0, %v2768_v32 }
 0x338   : > { %2777 = vrcp.f32 %v2039_v33  ;;  %v2040_v37 = vadd.f32 1.0, %v2770_v34 }
 0x339   : > { %2779 = vrcp.f32 %v2041_v35 }
 0x33a   : > { %2781 = vrcp.f32 %v2040_v37 }
 0x33f   : > { %v2772_v38 = vpop.eup %2771 }
 0x340   : > { %v2774_v39 = vpop.eup %2773  ;;  %v2058_v40 = vmul.f32 %v2772_v38, %v3321_v30 }
 0x341   : > { %v2776_v41 = vpop.eup %2775  ;;  %v2060_v45 = vmul.f32 %v2774_v39, %v3483_v46 }
 0x342   : > { %v2778_v48 = vpop.eup %2777  ;;  %2064 = vst [vmem:[%s375_s21] sm:$0xff] %v2058_v40  ;;  %v2059_v49 = vmul.f32 %v2776_v41, %v3481_v44 }
 0x343   : > { %v2780_v50 = vpop.eup %2779  ;;  %2066 = vst [vmem:[%s375_s21 + $0x10] sm:$0xff] %v2060_v45  ;;  %v2061_v51 = vmul.f32 %v2778_v48, %v3326_v36 }
 0x344   : > { %v2782_v52 = vpop.eup %2781  ;;  %2065 = vst [vmem:[%s375_s21 + $0x8] sm:$0xff] %v2059_v49  ;;  %v2063_v53 = vmul.f32 %v2780_v50, %v3487_v47 }
 0x345   : > { %2067 = vst [vmem:[%s375_s21 + $0x18] sm:$0xff] %v2061_v51  ;;  %v2062_v54 = vmul.f32 %v2782_v52, %v3485_v43 }
 0x346   : > { %2069 = vst [vmem:[%s375_s21 + $0x28] sm:$0xff] %v2063_v53 }
 0x347   : > { %2068 = vst [vmem:[%s375_s21 + $0x20] sm:$0xff] %v2062_v54 }
 0x348 PF: > { %s20_s30 = sadd.s32 1, %s2789_s30  }
 0x349   : > { %p17_p4 = scmp.ge.s32.totalorder %s20_s30, 4  }
 0x34b   :  { %19 = sbr.rel (!%p17_p4) target bundleno = 1 (0x1), region = 97 }

</bundles_post_ra>
